<compile_context>
chip_gen: v7x
topology: tpu7x:2x2x1
jax: 0.10.0
libtpu: 0.0.40
codegen_flags: <defaults>
</compile_context>

<pallas_src>
import jax
import jax.numpy as jnp
from jax.experimental import pallas as pl
from jax.experimental.pallas import tpu as pltpu


def _tokenizer_kernel(x_ref, o_ref):
    # x_ref: (C, TN) channel-major slab for one batch element / token tile.
    # o_ref: (TN, C) token-major output tile.
    # A plain 2-D transpose lowers to the XLU transpose (vxpose), which issues
    # in the "vector extended" slot and overlaps with the DMA pipeline.
    o_ref[...] = jnp.transpose(x_ref[...], (1, 0))


def _pick_token_tile(n, c, itemsize, budget_bytes=24 << 20):
    """Largest 128-multiple token tile that divides N and keeps the
    double-buffered (in + out) working set under `budget_bytes` (v7x-safe)."""
    for tn in (2048, 1024, 512, 256, 128):
        if n % tn == 0 and 4 * c * tn * itemsize <= budget_bytes:
            return tn
    # Fallback: full token axis (block == array dim is always legal).
    # Only hit when N is not a multiple of 128 (e.g. 10x10 patch grids).
    return n


def tokenize(x):
    """x: (B, C, H, W). Returns tokens (B, H*W, C) == x.flatten(2).transpose(1, 2)."""
    B, C, H, W = x.shape
    N = H * W
    itemsize = jnp.dtype(x.dtype).itemsize

    # Free row-major reshape (equivalent to torch .flatten(2)).
    x_cn = x.reshape(B, C, N)

    TN = _pick_token_tile(N, C, itemsize)
    num_tiles = N // TN

    # 2 live tiles (in + out) x 2 for double buffering, plus slack; clamp so we
    # stay comfortably below v7x's 64 MiB physical VMEM while still allowing
    # more than the 16/32 MiB scoped defaults on v5e/v6e.
    tile_bytes = C * TN * itemsize
    vmem_limit = int(min(max(4 * tile_bytes + (4 << 20), 16 << 20), 48 << 20))

    out_nc = pl.pallas_call(
        _tokenizer_kernel,
        out_shape=jax.ShapeDtypeStruct((B, N, C), x.dtype),
        grid=(B, num_tiles),
        in_specs=[
            # (C, TN) slab: full channel dim, n-th token tile of batch b.
            pl.BlockSpec((pl.Squeezed(), C, TN), lambda b, n: (b, 0, n)),
        ],
        # (TN, C) tile: contiguous TN*C chunk of the (B, N, C) output.
        out_specs=pl.BlockSpec((pl.Squeezed(), TN, C), lambda b, n: (b, n, 0)),
        compiler_params=pltpu.CompilerParams(
            dimension_semantics=("parallel", "parallel"),
            vmem_limit_bytes=vmem_limit,
        ),
    )(x_cn)

    return out_nc


def _reference(x):
    B, C, H, W = x.shape
    return jnp.transpose(x.reshape(B, C, H * W), (0, 2, 1))


if __name__ == "__main__":
    key = jax.random.PRNGKey(0)
    k0, k1 = jax.random.split(key)

    # Small shape consistent with the module: B=2, C=32, 16x16 spatial -> N=256.
    B, C, H, W = 2, 32, 16, 16
    x = jax.random.normal(k0, (B, C, H, W), dtype=jnp.float32)
    out = jax.block_until_ready(tokenize(x))
    assert out.shape == (B, H * W, C), out.shape
    assert out.dtype == x.dtype
    assert bool(jnp.array_equal(out, _reference(x)))

    # Second shape exercising the multi-tile grid path (N=4096 -> 2 tiles of 2048).
    B2, C2, H2, W2 = 2, 32, 64, 64
    x2 = jax.random.normal(k1, (B2, C2, H2, W2), dtype=jnp.float32)
    out2 = jax.block_until_ready(tokenize(x2))
    assert out2.shape == (B2, H2 * W2, C2)
    assert bool(jnp.array_equal(out2, _reference(x2)))

    print("KERNEL_OK")
</pallas_src>

<mosaic_0001>
module attributes {stable_mosaic.version = 11 : i64} {
  func.func @_tokenizer_kernel(%arg0: i32, %arg1: i32, %arg2: memref<1x32x256xf32, #tpu.memory_space<vmem>>, %arg3: memref<1x256x32xf32, #tpu.memory_space<vmem>>) attributes {dimension_semantics = [#tpu.dimension_semantics<parallel>, #tpu.dimension_semantics<parallel>], iteration_bounds = array<i64: 2, 1>, scalar_prefetch = 0 : i64, scratch_operands = 0 : i64, tpu.core_type = #tpu.core_type<tc>, window_params = [{transform_indices = @transform_0, window_bounds = array<i64: 1, 32, 256>}, {transform_indices = @transform_1, window_bounds = array<i64: 1, 256, 32>}]} {
    %c0 = arith.constant 0 : index
    %c0_0 = arith.constant 0 : index
    %c0_1 = arith.constant 0 : index
    %0 = vector.load %arg2[%c0, %c0_0, %c0_1] : memref<1x32x256xf32, #tpu.memory_space<vmem>>, vector<1x32x256xf32>
    %1 = vector.shape_cast %0 : vector<1x32x256xf32> to vector<32x256xf32>
    %2 = tpu.transpose %1, [1, 0] : vector<32x256xf32> -> vector<256x32xf32>
    %c0_2 = arith.constant 0 : index
    %c0_3 = arith.constant 0 : index
    %c0_4 = arith.constant 0 : index
    %3 = vector.load %arg3[%c0_2, %c0_3, %c0_4] : memref<1x256x32xf32, #tpu.memory_space<vmem>>, vector<1x256x32xf32>
    %4 = vector.shape_cast %3 : vector<1x256x32xf32> to vector<256x32xf32>
    %5 = vector.shape_cast %2 : vector<256x32xf32> to vector<1x256x32xf32>
    tpu.vector_store %arg3[%c0_2, %c0_3, %c0_4], %5 {strides = array<i32>} : memref<1x256x32xf32, #tpu.memory_space<vmem>>, vector<1x256x32xf32>,
    return
  }
  func.func @transform_0(%arg0: i32, %arg1: i32) -> (i32, i32, i32) {
    %c0_i32 = arith.constant 0 : i32
    %c0_i32_0 = arith.constant 0 : i32
    return %arg0, %c0_i32, %arg1 : i32, i32, i32
  }
  func.func @transform_1(%arg0: i32, %arg1: i32) -> (i32, i32, i32) {
    %c0_i32 = arith.constant 0 : i32
    %c0_i32_0 = arith.constant 0 : i32
    return %arg0, %arg1, %c0_i32 : i32, i32, i32
  }
}

</mosaic_0001>

<bundles_post_ra>
// kernel: tpu_custom_call.1
= control target key start
LH: loop header
LB: loop body
LE: loop exit
PB: predicated region body
PF: predicated region fallthrough
CT: control target
= control target key end

     0   :  { %6 = vsyncpa [#allocation3], 0  ;;  %s723_s0 = inlined_call_operand.hbm [shape: f32[2,32,256], index: 0, kind: input, shape index: {}]   ;;  %s724_s1 = inlined_call_operand.vmem [shape: f32[2,256,32], index: 1, kind: output, shape index: {}]  }
   0x1   :  { %8 = vsyncpa [#allocation3 + $0x1], 0  ;;  %s533_s6 = smov 0   ;;  %s535_s7 = smov 0  }
   0x2   :  { %s537_s8 = smov 0   ;;  %s539_s9 = smov 0  }
   0x3   :  { %s541_s10 = smov 0   ;;  %s543_s11 = smov 0  }
   0x4 LB: > { %s365_s12 = sadd.s32 4294967295, %s518_s11   ;;  %s26_s13 = sadd.s32 1, %s514_s10  ;;  %s518_s11 = sphi %s543_s11, %s14_s11   ;;  %s514_s10 = sphi %s541_s10, %s732_s10   ;;  %s510_s9 = sphi %s539_s9, %s731_s9   ;;  %s506_s8 = sphi %s537_s8, %s730_s8   ;;  %s502_s7 = sphi %s535_s7, %s729_s7   ;;  %s498_s6 = sphi %s533_s6, %s728_s6  }
   0x5   : > { %p28_p0 = scmp.ge.s32.totalorder %s26_s13, 2  ;;  %s35_s14 = sadd.s32 1, %s506_s8 }
   0x6   : > { %p42_p1 = scmp.ne.s32.totalorder %s506_s8, %s502_s7  ;;  %p43_p2 = scmp.eq.s32.totalorder %s518_s11, 0 }
   0x7   : > { %s734_s13 = smov (%p28_p0, %s26_s13), 0  ;;  %p48_p4 = scmp.ne.s32.totalorder %s502_s7, %s498_s6 }
   0x8   : > { %p569_p3 = por %p43_p2, %p42_p1  ;;  %s30_s16 = ssub.s32 %s514_s10, %s734_s13 }
   0x9   : > { %p49_p5 = scmp.eq.s32.totalorder %s365_s12, 0  ;;  %p33_p6 = scmp.eq.s32.totalorder %s30_s16, 0 }
   0xa   : > { %p386_p8 = scmp.lt.s32.totalorder %s518_s11, 2  ;;  %s100_s19 = sand.u32 1, %s506_s8  }
   0xb   : > { %p576_p7 = por %p49_p5, %p48_p4  ;;  %s378_s20 = sshll.u32 %s514_s10, 10 }
   0xc   : > { %s582_s18 = scalar_select %p33_p6, %s506_s8, %s35_s14  }
   0xd   : > { %s369_s21 = sshll.u32 %s100_s19, 6  ;;  %s589_s24 = scalar_lea.hbm %s723_s0, %s378_s20 }
   0xe   : > { %s104_s25 = scalar_lea.vmem [#allocation2], %s369_s21  ;;  %p593_p9 = pnand %p386_p8, %p569_p3 }
   0xf   : > { %s113_s26 = sshll.u32 %s104_s25, 4  ;;  %s599_s28 = scalar_lea.sflag [#allocation3], %s100_s19  ;;  %s597_s26 = int_to_ptr.vmem [resolvable:$true] %s113_s26 }
  0x10   : > { %s438_s29 = scalar_lea.hbm %s589_s24, 1024  ;;  %p440_p11 = pneg %p593_p9 }
  0x11   : > { %p439_p10 = scmp.ne.s32.totalorder %s589_s24, %s438_s29  ;;  %s443_s3 = scalar_lea.hbm %s723_s0, 2048 }
  0x12   : > { %p444_p0 = scmp.lt.u32.totalorder %s589_s24, %s723_s0  ;;  %p445_p1 = scmp.lt.u32.totalorder %s443_s3, %s438_s29 }
  0x13   : > { %p441_p12 = pnand %p440_p11, %p439_p10  ;;  %p447_p3 = scmp.lt.u32.totalorder %s438_s29, %s589_s24 }
  0x14   : > { %p446_p2 = por %p445_p1, %p444_p0 }
  0x15   : > { %p442_p13 = pneg %p441_p12 }
  0x16   : > { %p448_p4 = por %p447_p3, %p446_p2 }
  0x18   : > { %p449_p5 = pnand %p448_p4, %p442_p13 }
  0x1a   : > { %452 = shalt.err (!%p449_p5)
}
  0x1b   : > { %s453_s6 = scalar_lea.vmem %s597_s26, 1024  ;;  %s520_s12 = smov [#allocation2]  }
  0x1c   : > { %p454_p6 = scmp.ne.s32.totalorder %s597_s26, %s453_s6  ;;  %s458_s14 = sshll.u32 %s520_s12, 4  ;;  %s459_s14 = int_to_ptr.vmem [resolvable:$false] %s458_s14 }
  0x1d   : > { %s460_s15 = scalar_lea.vmem %s459_s14, 2048  ;;  %p461_p12 = scmp.lt.s32.totalorder %s597_s26, %s459_s14 }
  0x1e   : > { %p456_p8 = pnand %p454_p6, %p440_p11  ;;  %p462_p0 = scmp.lt.s32.totalorder %s460_s15, %s453_s6 }
  0x20   : > { %p457_p10 = pneg %p456_p8  ;;  %p463_p1 = por %p462_p0, %p461_p12 }
  0x22   : > { %p464_p2 = pnand %p463_p1, %p457_p10 }
  0x24   : > { %467 = shalt.err (!%p464_p2)
}
  0x25   : > { %s521_s16 = smov 256   ;;  %s522_s19 = smov 16  }
  0x26   : > { %385 = dma.hbm_to_vmem [thread:$0]  (!%p593_p9), %s589_s24, 1024, %s597_s26, %s599_s28, %s521_s16, %s521_s16, %s522_s19  }
  0x27   : > { %p372_p11 = scmp.ge.s32.totalorder %s518_s11, 1  ;;  %p121_p13 = scmp.lt.s32.totalorder %s518_s11, 3 }
  0x29   : > { %p122_p3 = pnand %p372_p11, %p121_p13 }
  0x2a   : > { %s127_s20 = sand.u32 (!%p122_p3), 1, %s502_s7  }
  0x2b   : > { %125 = sbr.rel (%p122_p3) target bundleno = 242 (0xf2), region = 24  ;;  %s373_s21 = sshll.u32 (!%p122_p3), %s127_s20, 6 }
  0x2c   : > { %s128_s22 = scalar_lea.sflag (!%p122_p3), [#allocation3], %s127_s20  ;;  %s131_s23 = scalar_lea.vmem (!%p122_p3), [#allocation2], %s373_s21 }
  0x32   : > { %493 = dma.done.wait (%p576_p7), %s128_s22, 1024  }
  0x33   : > { %495 = vsyncadd (%p576_p7), %s128_s22, 4294966272  ;;  %v166_v0 = vld [vmem:[%s131_s23 + $0x8] sm:$0xff]  ;;  %v165_v1 = vld [vmem:[%s131_s23] sm:$0xff]  ;;  %p156_p9 = scmp.lt.s32.totalorder %s510_s9, 1  ;;  %vm237_vm0 = vcmask 261120  }
  0x34   : > { %205 = vxpose.xlu1.b32.start [1/4] (short) %v166_v0, 128  ;;  %173 = vxpose.xlu0.b32.start [1/4] (short) %v165_v1, 128  ;;  %v168_v2 = vld [vmem:[%s131_s23 + $0x18] sm:$0xff]  ;;  %v167_v3 = vld [vmem:[%s131_s23 + $0x10] sm:$0xff]  ;;  %v170_v4 = vld [vmem:[%s131_s23 + $0x28] sm:$0xff] }
  0x35   : > { %v169_v5 = vld [vmem:[%s131_s23 + $0x20] sm:$0xff]  ;;  %v172_v6 = vld [vmem:[%s131_s23 + $0x38] sm:$0xff]  ;;  %v171_v7 = vld [vmem:[%s131_s23 + $0x30] sm:$0xff]  ;;  %s736_s9 = smov (!%p156_p9, %s510_s9), 1 }
  0x36   : > { %s379_s17 = sshll.u32 %s736_s9, 8 }
  0x37   : > { %s639_s26 = scalar_lea.vmem %s724_s1, %s379_s17 }
  0x38   : > { %206 = vxpose.xlu1.b32.cont [2/4] (short) %v168_v2, 128  ;;  %174 = vxpose.xlu0.b32.cont [2/4] (short) %v167_v3, 128 }
  0x3c   : > { %207 = vxpose.xlu1.b32.cont [3/4] (short) %v170_v4, 128  ;;  %175 = vxpose.xlu0.b32.cont [3/4] (short) %v169_v5, 128 }
  0x40   : > { %208 = vxpose.xlu1.b32.end [4/4] (short) %v172_v6, 128  ;;  %176 = vxpose.xlu0.b32.end [4/4] (short) %v171_v7, 128 }
  0xb4   : > { %v221_v8 = vpop.trf.xlu1  ;;  %v189_v9 = vpop.trf.xlu0 }
  0xb5   : > { %254 = vst.msk [vmem:[%s639_s26 + $0x80] sm:$0xff] %vm237_vm0, %v221_v8  ;;  %238 = vst.msk [vmem:[%s639_s26] sm:$0xff] %vm237_vm0, %v189_v9 }
  0xb8   : > { %v222_v10 = vpop.trf.xlu1  ;;  %v190_v11 = vpop.trf.xlu0 }
  0xb9   : > { %255 = vst.msk [vmem:[%s639_s26 + $0x88] sm:$0xff] %vm237_vm0, %v222_v10  ;;  %239 = vst.msk [vmem:[%s639_s26 + $0x8] sm:$0xff] %vm237_vm0, %v190_v11 }
  0xbc   : > { %v223_v12 = vpop.trf.xlu1  ;;  %v191_v13 = vpop.trf.xlu0 }
  0xbd   : > { %256 = vst.msk [vmem:[%s639_s26 + $0x90] sm:$0xff] %vm237_vm0, %v223_v12  ;;  %240 = vst.msk [vmem:[%s639_s26 + $0x10] sm:$0xff] %vm237_vm0, %v191_v13 }
  0xc0   : > { %v224_v14 = vpop.trf.xlu1  ;;  %v192_v15 = vpop.trf.xlu0 }
  0xc1   : > { %257 = vst.msk [vmem:[%s639_s26 + $0x98] sm:$0xff] %vm237_vm0, %v224_v14  ;;  %241 = vst.msk [vmem:[%s639_s26 + $0x18] sm:$0xff] %vm237_vm0, %v192_v15 }
  0xc4   : > { %v225_v16 = vpop.trf.xlu1  ;;  %v193_v17 = vpop.trf.xlu0 }
  0xc5   : > { %258 = vst.msk [vmem:[%s639_s26 + $0xa0] sm:$0xff] %vm237_vm0, %v225_v16  ;;  %242 = vst.msk [vmem:[%s639_s26 + $0x20] sm:$0xff] %vm237_vm0, %v193_v17 }
  0xc8   : > { %v226_v18 = vpop.trf.xlu1  ;;  %v194_v19 = vpop.trf.xlu0 }
  0xc9   : > { %259 = vst.msk [vmem:[%s639_s26 + $0xa8] sm:$0xff] %vm237_vm0, %v226_v18  ;;  %243 = vst.msk [vmem:[%s639_s26 + $0x28] sm:$0xff] %vm237_vm0, %v194_v19 }
  0xcc   : > { %v227_v20 = vpop.trf.xlu1  ;;  %v195_v21 = vpop.trf.xlu0 }
  0xcd   : > { %260 = vst.msk [vmem:[%s639_s26 + $0xb0] sm:$0xff] %vm237_vm0, %v227_v20  ;;  %244 = vst.msk [vmem:[%s639_s26 + $0x30] sm:$0xff] %vm237_vm0, %v195_v21 }
  0xd0   : > { %v228_v22 = vpop.trf.xlu1  ;;  %v196_v23 = vpop.trf.xlu0 }
  0xd1   : > { %261 = vst.msk [vmem:[%s639_s26 + $0xb8] sm:$0xff] %vm237_vm0, %v228_v22  ;;  %245 = vst.msk [vmem:[%s639_s26 + $0x38] sm:$0xff] %vm237_vm0, %v196_v23 }
  0xd4   : > { %v229_v24 = vpop.trf.xlu1  ;;  %v197_v25 = vpop.trf.xlu0 }
  0xd5   : > { %262 = vst.msk [vmem:[%s639_s26 + $0xc0] sm:$0xff] %vm237_vm0, %v229_v24  ;;  %246 = vst.msk [vmem:[%s639_s26 + $0x40] sm:$0xff] %vm237_vm0, %v197_v25 }
  0xd8   : > { %v230_v26 = vpop.trf.xlu1  ;;  %v198_v27 = vpop.trf.xlu0 }
  0xd9   : > { %263 = vst.msk [vmem:[%s639_s26 + $0xc8] sm:$0xff] %vm237_vm0, %v230_v26  ;;  %247 = vst.msk [vmem:[%s639_s26 + $0x48] sm:$0xff] %vm237_vm0, %v198_v27 }
  0xdc   : > { %v231_v28 = vpop.trf.xlu1  ;;  %v199_v29 = vpop.trf.xlu0 }
  0xdd   : > { %264 = vst.msk [vmem:[%s639_s26 + $0xd0] sm:$0xff] %vm237_vm0, %v231_v28  ;;  %248 = vst.msk [vmem:[%s639_s26 + $0x50] sm:$0xff] %vm237_vm0, %v199_v29 }
  0xe0   : > { %v232_v30 = vpop.trf.xlu1  ;;  %v200_v31 = vpop.trf.xlu0 }
  0xe1   : > { %265 = vst.msk [vmem:[%s639_s26 + $0xd8] sm:$0xff] %vm237_vm0, %v232_v30  ;;  %249 = vst.msk [vmem:[%s639_s26 + $0x58] sm:$0xff] %vm237_vm0, %v200_v31 }
  0xe4   : > { %v233_v32 = vpop.trf.xlu1  ;;  %v201_v33 = vpop.trf.xlu0 }
  0xe5   : > { %266 = vst.msk [vmem:[%s639_s26 + $0xe0] sm:$0xff] %vm237_vm0, %v233_v32  ;;  %250 = vst.msk [vmem:[%s639_s26 + $0x60] sm:$0xff] %vm237_vm0, %v201_v33 }
  0xe8   : > { %v234_v34 = vpop.trf.xlu1  ;;  %v202_v35 = vpop.trf.xlu0 }
  0xe9   : > { %267 = vst.msk [vmem:[%s639_s26 + $0xe8] sm:$0xff] %vm237_vm0, %v234_v34  ;;  %251 = vst.msk [vmem:[%s639_s26 + $0x68] sm:$0xff] %vm237_vm0, %v202_v35 }
  0xec   : > { %v235_v36 = vpop.trf.xlu1  ;;  %v203_v37 = vpop.trf.xlu0 }
  0xed   : > { %268 = vst.msk [vmem:[%s639_s26 + $0xf0] sm:$0xff] %vm237_vm0, %v235_v36  ;;  %252 = vst.msk [vmem:[%s639_s26 + $0x70] sm:$0xff] %vm237_vm0, %v203_v37 }
  0xf0   : > { %v236_v38 = vpop.trf.xlu1  ;;  %v204_v39 = vpop.trf.xlu0 }
  0xf1   : > { %269 = vst.msk [vmem:[%s639_s26 + $0xf8] sm:$0xff] %vm237_vm0, %v236_v38  ;;  %253 = vst.msk [vmem:[%s639_s26 + $0x78] sm:$0xff] %vm237_vm0, %v204_v39 }
  0xf2 PF: > { %s14_s11 = sadd.s32 1, %s518_s11   ;;  %s728_s6 = smov %s502_s7 }
  0xf3   : > { %p11_p7 = scmp.ge.s32.totalorder %s14_s11, 4   ;;  %s729_s7 = smov %s506_s8 }
  0xf4   : > { %s730_s8 = smov %s582_s18  ;;  %s731_s9 = smov %s514_s10 }
  0xf5   : > { %s732_s10 = smov %s734_s13  ;;  %13 = sbr.rel (!%p11_p7) target bundleno = 4 (0x4), region = 64 }
  0xfc   :  { %300 = vsyncpa [#allocation3], 1 }
  0xfd   :  { %302 = vsyncpa [#allocation3 + $0x1], 1 }

</bundles_post_ra>
